<compile_context>
chip_gen: v5e
topology: v5e:2x2
jax: 0.10.0
libtpu: 0.0.40
codegen_flags: <defaults>
</compile_context>

<pallas_src>
import jax
import jax.numpy as jnp
from jax.experimental import pallas as pl
from jax.experimental.pallas import tpu as pltpu

EPS = 1e-5
NEG_SLOPE = 0.2
_K_FULL_MAX = 2048                     # contractions up to this stay one full-dim K block
_STEP_TARGET_BYTES = 2 * 1024 * 1024   # target patch bytes per grid step


def _round_up(x: int, m: int) -> int:
    return (x + m - 1) // m * m


def _pick_tile(total: int, max_tile: int, multiple: int) -> int:
    """Largest divisor of `total` that is a multiple of `multiple` and <= max_tile.
    Falls back to the full dim (always a legal block shape)."""
    if total <= max_tile:
        return total
    t = (max_tile // multiple) * multiple
    while t >= multiple:
        if total % t == 0:
            return t
        t -= multiple
    return total


def _vmem_budget_bytes() -> int:
    """Per-generation VMEM budget (v7x: 64 MiB physical -> ~38 MiB; v5e/v6e: 128 MiB)."""
    cap = 64 * 1024 * 1024             # conservative default = v7x per-core VMEM
    try:
        info = pltpu.get_tpu_info()
        cap = int(getattr(info, "vmem_capacity_bytes", cap))
    except Exception:
        pass
    cap = max(cap, 32 * 1024 * 1024)
    return max(min(int(cap * 0.6), 100 * 1024 * 1024), 24 * 1024 * 1024)


def _conv_out_size(H, W, k=4, stride=2, pad=1):
    Ho = (H + 2 * pad - k) // stride + 1
    Wo = (W + 2 * pad - k) // stride + 1
    return Ho, Wo


def _im2col_taps(x, k=4, stride=2, pad=1):
    """x: (N, C, H, W) -> reflect-padded strided taps (N, C, k*k, Ho, Wo)."""
    N, C, H, W = x.shape
    Ho, Wo = _conv_out_size(H, W, k, stride, pad)
    xp = jnp.pad(x, ((0, 0), (0, 0), (pad, pad), (pad, pad)), mode="reflect")
    taps = []
    for kh in range(k):
        for kw in range(k):
            taps.append(xp[:, :, kh:kh + stride * Ho:stride, kw:kw + stride * Wo:stride])
    return jnp.stack(taps, axis=2), Ho, Wo


# ----------------------------------------------------------------------------------
# Kernel A: large spatial extent — P (=Ho*Wo) is lane-dense: (Cout, K) @ (K, P).
# ----------------------------------------------------------------------------------
def _make_kernel_p_lanes(p_tile: int, p_pad: int, p_actual: int, single_k: bool):
    inv_p = 1.0 / float(p_actual)
    need_mask = p_pad != p_actual

    def kernel(patches_ref, w_ref, o_ref):
        # patches_ref: (1, K_TILE, P_TILE) bf16
        # w_ref:       (COUT_TILE, K_TILE) bf16   (block index constant across p)
        # o_ref:       (1, COUT_TILE, P_pad) f32  (resident across the k and p axes)
        k = pl.program_id(2)
        p = pl.program_id(3)
        last_k = pl.num_programs(2) - 1
        last_p = pl.num_programs(3) - 1
        start = pl.multiple_of(p * p_tile, p_tile)

        y = jnp.dot(w_ref[...], patches_ref[0], preferred_element_type=jnp.float32)
        if single_k:
            o_ref[0, :, pl.ds(start, p_tile)] = y
        else:
            @pl.when(k == 0)
            def _():
                o_ref[0, :, pl.ds(start, p_tile)] = y

            @pl.when(k > 0)
            def _():
                o_ref[0, :, pl.ds(start, p_tile)] = (
                    o_ref[0, :, pl.ds(start, p_tile)] + y)

        def epilogue():
            yb = o_ref[0]                                      # (COUT_TILE, P_pad) f32
            # Padded tail columns are exact zeros (zero-padded patches), so the sum is
            # already the sum over the real P columns.
            mean = jnp.sum(yb, axis=1, keepdims=True) * inv_p
            d = yb - mean
            if need_mask:
                lane = jax.lax.broadcasted_iota(jnp.int32, yb.shape, 1)
                d = jnp.where(lane < p_actual, d, 0.0)
            var = jnp.sum(d * d, axis=1, keepdims=True) * inv_p
            yn = (yb - mean) * jax.lax.rsqrt(var + EPS)
            o_ref[0] = jnp.where(yn >= 0, yn, NEG_SLOPE * yn).astype(o_ref.dtype)

        done = (p == last_p) if single_k else jnp.logical_and(k == last_k, p == last_p)
        pl.when(done)(epilogue)

    return kernel


def _encoder_p_lanes(x, weight, budget):
    N, Cin, H, W = x.shape
    Cout = weight.shape[0]
    K = Cin * 16
    taps, Ho, Wo = _im2col_taps(x)
    P = Ho * Wo

    # (N, C, 16, Ho, Wo) -> (N, K, P); K index = c*16 + kh*4 + kw (matches weight.reshape)
    patches = taps.reshape(N, K, P)

    if K <= _K_FULL_MAX:
        K_pad = K                       # Cin*16 is already a sublane multiple; full-dim block
        K_TILE = K_pad
    else:
        K_pad = _round_up(K, 128)
        K_TILE = _pick_tile(K_pad, _K_FULL_MAX, 128)

    Cout_pad = _round_up(Cout, 16)
    P_pad = _round_up(P, 128)

    # Bound the resident (COUT_TILE, P_pad) f32 output block by the VMEM budget.
    cout_cap = min(256, max(16, (budget // 3) // (8 * P_pad)))
    if N == 1 and Cout_pad >= 32:
        # Keep >= 2 parallel Cout blocks so both v7x TensorCores get work at batch 1.
        cout_cap = min(cout_cap, Cout_pad // 2)
    COUT_TILE = _pick_tile(Cout_pad, cout_cap, 16)

    # P tile: ~2 MiB of patch bytes per grid step, bounded by the remaining VMEM.
    resident = 8 * COUT_TILE * P_pad + 4 * COUT_TILE * K_TILE
    avail = max(budget - resident, 512 * 1024)
    p_cap = min(_STEP_TARGET_BYTES // (2 * K_TILE), avail // (4 * K_TILE), 4096)
    p_cap = max(p_cap, 128)
    P_TILE = _pick_tile(P_pad, p_cap, 128)

    patches = jnp.pad(patches, ((0, 0), (0, K_pad - K), (0, P_pad - P))).astype(jnp.bfloat16)
    w_mat = jnp.pad(weight.reshape(Cout, K),
                    ((0, Cout_pad - Cout), (0, K_pad - K))).astype(jnp.bfloat16)

    n_c = Cout_pad // COUT_TILE
    n_k = K_pad // K_TILE
    n_p = P_pad // P_TILE

    kernel = _make_kernel_p_lanes(P_TILE, P_pad, P, n_k == 1)

    out = pl.pallas_call(
        kernel,
        out_shape=jax.ShapeDtypeStruct((N, Cout_pad, P_pad), jnp.float32),
        grid_spec=pltpu.PrefetchScalarGridSpec(
            num_scalar_prefetch=0,
            grid=(N, n_c, n_k, n_p),            # p innermost: weight block constant over p
            in_specs=[
                pl.BlockSpec((1, K_TILE, P_TILE), lambda n, c, k, p: (n, k, p)),
                pl.BlockSpec((COUT_TILE, K_TILE), lambda n, c, k, p: (c, k)),
            ],
            out_specs=pl.BlockSpec((1, COUT_TILE, P_pad), lambda n, c, k, p: (n, c, 0)),
        ),
        compiler_params=pltpu.CompilerParams(
            dimension_semantics=("parallel", "parallel", "arbitrary", "arbitrary"),
            vmem_limit_bytes=budget,
        ),
        cost_estimate=pl.CostEstimate(
            flops=2 * N * Cout_pad * K_pad * P_pad,
            transcendentals=N * Cout_pad,
            bytes_accessed=int(patches.size) * 2 + int(w_mat.size) * 2
            + N * Cout_pad * P_pad * 4,
        ),
    )(patches, w_mat)

    # Output is already channel-major: slicing + reshape to NCHW is free.
    return out[:, :Cout, :P].reshape(N, Cout, Ho, Wo)


# ----------------------------------------------------------------------------------
# Kernel B: small spatial extent (P < 256) — Cout is lane-dense: (P, K) @ (K, Cout).
# ----------------------------------------------------------------------------------
def _make_kernel_c_lanes(p_pad: int, p_actual: int, single_k: bool):
    inv_p = 1.0 / float(p_actual)
    need_mask = p_pad != p_actual

    def kernel(patches_ref, w_ref, o_ref):
        # patches_ref: (1, P_pad, K_TILE) bf16
        # w_ref:       (K_TILE, COUT_TILE) bf16
        # o_ref:       (1, P_pad, COUT_TILE) f32  (resident across the k axis)
        k = pl.program_id(2)
        last_k = pl.num_programs(2) - 1

        y = jnp.dot(patches_ref[0], w_ref[...], preferred_element_type=jnp.float32)
        if single_k:
            o_ref[0] = y
        else:
            @pl.when(k == 0)
            def _():
                o_ref[0] = y

            @pl.when(k > 0)
            def _():
                o_ref[0] = o_ref[0] + y

        def epilogue():
            yb = o_ref[0]                                      # (P_pad, COUT_TILE) f32
            mean = jnp.sum(yb, axis=0, keepdims=True) * inv_p  # padded rows are zeros
            d = yb - mean
            if need_mask:
                row = jax.lax.broadcasted_iota(jnp.int32, yb.shape, 0)
                d = jnp.where(row < p_actual, d, 0.0)
            var = jnp.sum(d * d, axis=0, keepdims=True) * inv_p
            yn = (yb - mean) * jax.lax.rsqrt(var + EPS)
            o_ref[0] = jnp.where(yn >= 0, yn, NEG_SLOPE * yn).astype(o_ref.dtype)

        if single_k:
            epilogue()
        else:
            pl.when(k == last_k)(epilogue)

    return kernel


def _encoder_c_lanes(x, weight, budget):
    N, Cin, H, W = x.shape
    Cout = weight.shape[0]
    K = Cin * 16
    taps, Ho, Wo = _im2col_taps(x)
    P = Ho * Wo

    # (N, C, 16, Ho, Wo) -> (N, P, K): spatial on sublanes, channels lane-dense.
    patches_t = taps.transpose(0, 3, 4, 1, 2).reshape(N, P, K)

    if K <= _K_FULL_MAX:
        K_pad = K
        K_TILE = K_pad
    else:
        K_pad = _round_up(K, 128)
        K_TILE = _pick_tile(K_pad, _K_FULL_MAX, 128)

    P_pad = _round_up(P, 16)
    Cout_pad = _round_up(Cout, 128)

    cout_cap = 512
    if N == 1 and Cout_pad >= 256:
        # Keep >= 2 parallel Cout blocks for v7x megacore at batch 1.
        cout_cap = min(cout_cap, Cout_pad // 2)
    COUT_TILE = _pick_tile(Cout_pad, cout_cap, 128)

    patches_t = jnp.pad(patches_t,
                        ((0, 0), (0, P_pad - P), (0, K_pad - K))).astype(jnp.bfloat16)
    w_mat = jnp.pad(weight.reshape(Cout, K).T,
                    ((0, K_pad - K), (0, Cout_pad - Cout))).astype(jnp.bfloat16)

    n_c = Cout_pad // COUT_TILE
    n_k = K_pad // K_TILE

    kernel = _make_kernel_c_lanes(P_pad, P, n_k == 1)

    out = pl.pallas_call(
        kernel,
        out_shape=jax.ShapeDtypeStruct((N, P_pad, Cout_pad), jnp.float32),
        grid_spec=pltpu.PrefetchScalarGridSpec(
            num_scalar_prefetch=0,
            grid=(N, n_c, n_k),
            in_specs=[
                pl.BlockSpec((1, P_pad, K_TILE), lambda n, c, k: (n, 0, k)),
                pl.BlockSpec((K_TILE, COUT_TILE), lambda n, c, k: (k, c)),
            ],
            out_specs=pl.BlockSpec((1, P_pad, COUT_TILE), lambda n, c, k: (n, 0, c)),
        ),
        compiler_params=pltpu.CompilerParams(
            dimension_semantics=("parallel", "parallel", "arbitrary"),
            vmem_limit_bytes=budget,
        ),
        cost_estimate=pl.CostEstimate(
            flops=2 * N * Cout_pad * K_pad * P_pad,
            transcendentals=N * Cout_pad,
            bytes_accessed=int(patches_t.size) * 2 + int(w_mat.size) * 2
            + N * P_pad * Cout_pad * 4,
        ),
    )(patches_t, w_mat)

    # (N, P_pad, Cout_pad) -> (N, Cout, Ho, Wo); tiny transpose (P < 256) at JAX level.
    return out[:, :P, :Cout].transpose(0, 2, 1).reshape(N, Cout, Ho, Wo)


def encoder_block(x, weight):
    """x: (N, Cin, H, W) f32, weight: (Cout, Cin, 4, 4) f32 -> (N, Cout, Ho, Wo) f32."""
    _, _, H, W = x.shape
    Ho, Wo = _conv_out_size(H, W)
    budget = _vmem_budget_bytes()
    if Ho * Wo >= 256:
        return _encoder_p_lanes(x, weight, budget)   # spatial lane-dense
    return _encoder_c_lanes(x, weight, budget)       # channel lane-dense (deep layers)


def _reference(x, weight):
    """Pure-JAX (f32) reference for sanity checking."""
    xp = jnp.pad(x, ((0, 0), (0, 0), (1, 1), (1, 1)), mode="reflect")
    y = jax.lax.conv_general_dilated(
        xp, weight, window_strides=(2, 2), padding="VALID",
        dimension_numbers=("NCHW", "OIHW", "NCHW"))
    mean = jnp.mean(y, axis=(2, 3), keepdims=True)
    var = jnp.mean((y - mean) ** 2, axis=(2, 3), keepdims=True)
    y = (y - mean) / jnp.sqrt(var + EPS)
    return jnp.where(y >= 0, y, NEG_SLOPE * y)


if __name__ == "__main__":
    key = jax.random.PRNGKey(0)
    kx1, kw1, kx2, kw2 = jax.random.split(key, 4)

    # Case 1: small spatial output (P = 8*8 = 64 < 256) -> channel-lane-dense path.
    N, Cin, H, W, Cout = 2, 4, 16, 16, 8
    x1 = jax.random.normal(kx1, (N, Cin, H, W), dtype=jnp.float32)
    w1 = 0.1 * jax.random.normal(kw1, (Cout, Cin, 4, 4), dtype=jnp.float32)
    out1 = jax.block_until_ready(encoder_block(x1, w1))
    ref1 = _reference(x1, w1)
    assert out1.shape == (N, Cout, H // 2, W // 2)
    err1 = float(jnp.max(jnp.abs(out1 - ref1)))
    # bf16 MXU operands (f32 accumulation / stats) -> loosened tolerance vs f32 reference.
    assert jnp.allclose(out1, ref1, atol=5e-2, rtol=5e-2), err1

    # Case 2: larger spatial output (P = 16*16 = 256) -> spatial-lane-dense path.
    N2, Cin2, H2, W2, Cout2 = 1, 4, 32, 32, 8
    x2 = jax.random.normal(kx2, (N2, Cin2, H2, W2), dtype=jnp.float32)
    w2 = 0.1 * jax.random.normal(kw2, (Cout2, Cin2, 4, 4), dtype=jnp.float32)
    out2 = jax.block_until_ready(encoder_block(x2, w2))
    ref2 = _reference(x2, w2)
    assert out2.shape == (N2, Cout2, H2 // 2, W2 // 2)
    err2 = float(jnp.max(jnp.abs(out2 - ref2)))
    assert jnp.allclose(out2, ref2, atol=5e-2, rtol=5e-2), err2

    print("KERNEL_OK")
</pallas_src>

<mosaic_0001>
module attributes {stable_mosaic.version = 11 : i64} {
  func.func @kernel(%arg0: i32, %arg1: i32, %arg2: i32, %arg3: memref<1x64x64xbf16, #tpu.memory_space<vmem>>, %arg4: memref<64x128xbf16, #tpu.memory_space<vmem>>, %arg5: memref<1x64x128xf32, #tpu.memory_space<vmem>>) attributes {dimension_semantics = [#tpu.dimension_semantics<parallel>, #tpu.dimension_semantics<parallel>, #tpu.dimension_semantics<arbitrary>], iteration_bounds = array<i64: 2, 1, 1>, scalar_prefetch = 0 : i64, scratch_operands = 0 : i64, tpu.core_type = #tpu.core_type<tc>, window_params = [{transform_indices = @transform_0, window_bounds = array<i64: 1, 64, 64>}, {transform_indices = @transform_1, window_bounds = array<i64: 64, 128>}, {transform_indices = @transform_2, window_bounds = array<i64: 1, 64, 128>}]} {
    %c0 = arith.constant 0 : index
    %c0_0 = arith.constant 0 : index
    %c0_1 = arith.constant 0 : index
    %0 = vector.load %arg3[%c0, %c0_0, %c0_1] : memref<1x64x64xbf16, #tpu.memory_space<vmem>>, vector<1x64x64xbf16>
    %1 = vector.shape_cast %0 : vector<1x64x64xbf16> to vector<64x64xbf16>
    %c0_2 = arith.constant 0 : index
    %c0_3 = arith.constant 0 : index
    %2 = vector.load %arg4[%c0_2, %c0_3] : memref<64x128xbf16, #tpu.memory_space<vmem>>, vector<64x128xbf16>
    %cst = arith.constant dense<0.000000e+00> : vector<64x128xf32>
    %3 = tpu.matmul %1, %2, %cst {dimension_numbers = #tpu.dot_dimension_numbers<[1], [0], [0], [1], [0, 0, 1, 1], [], []>} : vector<64x64xbf16>, vector<64x128xbf16>, vector<64x128xf32> -> vector<64x128xf32>
    %c0_4 = arith.constant 0 : index
    %c0_5 = arith.constant 0 : index
    %c0_6 = arith.constant 0 : index
    %4 = vector.load %arg5[%c0_4, %c0_5, %c0_6] : memref<1x64x128xf32, #tpu.memory_space<vmem>>, vector<1x64x128xf32>
    %5 = vector.shape_cast %4 : vector<1x64x128xf32> to vector<64x128xf32>
    %6 = vector.shape_cast %3 : vector<64x128xf32> to vector<1x64x128xf32>
    tpu.vector_store %arg5[%c0_4, %c0_5, %c0_6], %6 {strides = array<i32>} : memref<1x64x128xf32, #tpu.memory_space<vmem>>, vector<1x64x128xf32>,
    %c0_7 = arith.constant 0 : index
    %c0_8 = arith.constant 0 : index
    %c0_9 = arith.constant 0 : index
    %7 = vector.load %arg5[%c0_7, %c0_8, %c0_9] : memref<1x64x128xf32, #tpu.memory_space<vmem>>, vector<1x64x128xf32>
    %8 = vector.shape_cast %7 : vector<1x64x128xf32> to vector<64x128xf32>
    %cst_10 = arith.constant dense<0.000000e+00> : vector<128xf32>
    %9 = vector.multi_reduction <add>, %8, %cst_10 [0] : vector<64x128xf32> to vector<128xf32>
    %10 = vector.shape_cast %9 : vector<128xf32> to vector<1x128xf32>
    %cst_11 = arith.constant 1.562500e-02 : f32
    %11 = vector.broadcast %cst_11 : f32 to vector<1x128xf32>
    %12 = arith.mulf %10, %11 : vector<1x128xf32>
    %13 = vector.broadcast %12 : vector<1x128xf32> to vector<64x128xf32>
    %14 = arith.subf %8, %13 : vector<64x128xf32>
    %15 = arith.mulf %14, %14 : vector<64x128xf32>
    %cst_12 = arith.constant dense<0.000000e+00> : vector<128xf32>
    %16 = vector.multi_reduction <add>, %15, %cst_12 [0] : vector<64x128xf32> to vector<128xf32>
    %17 = vector.shape_cast %16 : vector<128xf32> to vector<1x128xf32>
    %cst_13 = arith.constant 1.562500e-02 : f32
    %18 = vector.broadcast %cst_13 : f32 to vector<1x128xf32>
    %19 = arith.mulf %17, %18 : vector<1x128xf32>
    %20 = vector.broadcast %12 : vector<1x128xf32> to vector<64x128xf32>
    %21 = arith.subf %8, %20 : vector<64x128xf32>
    %cst_14 = arith.constant 9.99999974E-6 : f32
    %22 = vector.broadcast %cst_14 : f32 to vector<1x128xf32>
    %23 = arith.addf %19, %22 : vector<1x128xf32>
    %24 = math.rsqrt %23 : vector<1x128xf32>
    %25 = vector.broadcast %24 : vector<1x128xf32> to vector<64x128xf32>
    %26 = arith.mulf %21, %25 : vector<64x128xf32>
    %cst_15 = arith.constant 0.000000e+00 : f32
    %27 = vector.broadcast %cst_15 : f32 to vector<64x128xf32>
    %28 = arith.cmpf oge, %26, %27 : vector<64x128xf32>
    %cst_16 = arith.constant 2.000000e-01 : f32
    %29 = vector.broadcast %cst_16 : f32 to vector<64x128xf32>
    %30 = arith.mulf %29, %26 : vector<64x128xf32>
    %31 = arith.select %28, %26, %30 : vector<64x128xi1>, vector<64x128xf32>
    %c0_17 = arith.constant 0 : index
    %c0_18 = arith.constant 0 : index
    %c0_19 = arith.constant 0 : index
    %32 = vector.load %arg5[%c0_17, %c0_18, %c0_19] : memref<1x64x128xf32, #tpu.memory_space<vmem>>, vector<1x64x128xf32>
    %33 = vector.shape_cast %32 : vector<1x64x128xf32> to vector<64x128xf32>
    %34 = vector.shape_cast %31 : vector<64x128xf32> to vector<1x64x128xf32>
    tpu.vector_store %arg5[%c0_17, %c0_18, %c0_19], %34 {strides = array<i32>} : memref<1x64x128xf32, #tpu.memory_space<vmem>>, vector<1x64x128xf32>,
    return
  }
  func.func @transform_0(%arg0: i32, %arg1: i32, %arg2: i32) -> (i32, i32, i32) {
    %c0_i32 = arith.constant 0 : i32
    %c0_i32_0 = arith.constant 0 : i32
    return %arg0, %c0_i32, %arg2 : i32, i32, i32
  }
  func.func @transform_1(%arg0: i32, %arg1: i32, %arg2: i32) -> (i32, i32) {
    %c0_i32 = arith.constant 0 : i32
    return %arg2, %arg1 : i32, i32
  }
  func.func @transform_2(%arg0: i32, %arg1: i32, %arg2: i32) -> (i32, i32, i32) {
    %c0_i32 = arith.constant 0 : i32
    %c0_i32_0 = arith.constant 0 : i32
    return %arg0, %c0_i32, %arg1 : i32, i32, i32
  }
}

</mosaic_0001>

<bundles_post_ra>
// kernel: tpu_custom_call.1
= control target key start
LH: loop header
LB: loop body
LE: loop exit
PB: predicated region body
PF: predicated region fallthrough
CT: control target
= control target key end

     0   :  { %7 = vsyncpa [#allocation3], 0  ;;  %s1031_s0 = inlined_call_operand.hbm [shape: bf16[2,64,64], index: 0, kind: input, shape index: {}]   ;;  %s1032_s1 = inlined_call_operand.hbm [shape: bf16[64,128], index: 1, kind: input, shape index: {}]   ;;  %s1033_s2 = inlined_call_operand.hbm [shape: f32[2,64,128], index: 2, kind: output, shape index: {}]  }
   0x1   :  { %9 = vsyncpa [#allocation3 + $0x1], 0 }
   0x2   :  { %10 = vsyncpa [#allocation6], 0 }
   0x3   :  { %11 = vsyncpa [#allocation4], 0 }
   0x4   :  { %13 = vsyncpa [#allocation4 + $0x1], 0  ;;  %s872_s9 = smov 0   ;;  %s874_s10 = smov 0  }
   0x5   :  { %s876_s11 = smov 0   ;;  %s878_s12 = smov 0  }
   0x6   :  { %s880_s13 = smov 0   ;;  %s882_s14 = smov 0  }
   0x7 LB: > { %s550_s15 = sadd.s32 4294967295, %s850_s14   ;;  %s551_s16 = sadd.s32 4294967294, %s850_s14   ;;  %s850_s14 = sphi %s882_s14, %s19_s14   ;;  %s846_s13 = sphi %s880_s13, %s1045_s13   ;;  %s842_s12 = sphi %s878_s12, %s1044_s12   ;;  %s838_s11 = sphi %s876_s11, %s1043_s11   ;;  %s834_s10 = sphi %s874_s10, %s1042_s10   ;;  %s830_s9 = sphi %s872_s9, %s1041_s9  }
   0x8   : > { %p60_p0 = scmp.ne.s32.totalorder %s834_s10, %s830_s9  ;;  %p906_p1 = scmp.eq.s32.totalorder %s550_s15, 0 }
   0x9   : > { %p910_p2 = scmp.eq.s32.totalorder %s550_s15, 1  ;;  %p120_p3 = scmp.eq.s32.totalorder %s551_s16, 1 }
   0xa   : > { %p916_p4 = por %p906_p1, %p60_p0  ;;  %p552_p5 = scmp.ge.s32.totalorder %s850_s14, 1 }
   0xb   : > { %p921_p6 = por %p120_p3, %p60_p0  ;;  %p127_p7 = scmp.lt.s32.totalorder %s850_s14, 3 }
   0xc   : > { %s142_s23 = sshll.u32 %s1032_s1, 4  ;;  %s852_s25 = smov [#allocation5]   ;;  %s143_s23 = int_to_ptr.hbm [resolvable:$true] %s142_s23 }
   0xd   : > { %p929_p8 = pnand %p552_p5, %p127_p7  ;;  %s144_s26 = sshll.u32 %s852_s25, 4  ;;  %s145_s26 = int_to_ptr.vmem [resolvable:$true] %s144_s26 }
   0xe   : > { %p554_p11 = scmp.ge.s32.totalorder %s850_s14, 2  ;;  %s853_s27 = smov 64  }
   0xf   : > { %p633_p9 = pneg %p929_p8  ;;  %s854_s28 = smov 4  }
  0x10   : > { %s38_s29 = sadd.s32 1, %s846_s13  ;;  %s47_s30 = sadd.s32 1, %s838_s11 }
  0x11   : > { %p634_p10 = pnand %p633_p9, %p906_p1  ;;  %p40_p12 = scmp.ge.s32.totalorder %s38_s29, 2 }
  0x12   : > { %p54_p13 = scmp.ne.s32.totalorder %s838_s11, %s834_s10  ;;  %p55_p0 = scmp.eq.s32.totalorder %s850_s14, 0 }
  0x13   : > { %636 = dma.hbm_to_vmem [thread:$0]  (!%p634_p10), %s143_s23, 512, %s145_s26, [#allocation6], %s853_s27, %s853_s27, %s854_s28  }
  0x14   : > { %s1047_s29 = smov (%p40_p12, %s38_s29), 0  ;;  %p948_p3 = por %p55_p0, %p54_p13 }
  0x15   : > { %p954_p5 = por %p910_p2, %p54_p13  ;;  %s42_s5 = ssub.s32 %s846_s13, %s1047_s29 }
  0x16   : > { %p646_p7 = scmp.lt.s32.totalorder %s850_s14, 2  ;;  %p45_p9 = scmp.eq.s32.totalorder %s42_s5, 0 }
  0x17   : > { %s158_s6 = sand.u32 1, %s838_s11   ;;  %s603_s15 = sshll.u32 %s846_s13, 5 }
  0x18   : > { %s555_s7 = sshll.u32 %s158_s6, 5  ;;  %s168_s22 = scalar_lea.hbm %s1031_s0, %s603_s15 }
  0x19   : > { %s963_s8 = scalar_select %p45_p9, %s838_s11, %s47_s30  }
  0x1a   : > { %s162_s23 = scalar_lea.vmem [#allocation2], %s555_s7  ;;  %s169_s18 = sshll.u32 %s168_s22, 4  ;;  %s170_s18 = int_to_ptr.hbm [resolvable:$true] %s169_s18 }
  0x1b   : > { %s171_s25 = sshll.u32 %s162_s23, 4  ;;  %p638_p2 = pnand %p646_p7, %p948_p3  ;;  %s172_s25 = int_to_ptr.vmem [resolvable:$true] %s171_s25 }
  0x1c   : > { %s159_s26 = scalar_lea.sflag [#allocation3], %s158_s6  ;;  %183 = sbr.rel (%p929_p8) target bundleno = 283 (0x11b), region = 28 }
  0x1d   : > { %640 = dma.hbm_to_vmem [thread:$0]  (!%p638_p2), %s170_s18, 512, %s172_s25, %s159_s26, %s853_s27, %s853_s27, %s854_s28  }
  0x1e   : > { %s977_s30 = sand.u32 (!%p929_p8), 1, %s834_s10  }
  0x1f   : > { %s559_s5 = sshll.u32 (!%p929_p8), %s977_s30, 5  ;;  %s186_s7 = scalar_lea.sflag (!%p929_p8), [#allocation3], %s977_s30 }
  0x20   : > { %s189_s15 = scalar_lea.vmem (!%p929_p8), [#allocation2], %s559_s5 }
  0x21   : > { %817 = dma.done.wait (%p916_p4), %s186_s7, 512  }
  0x22   : > { %819 = vsyncadd (%p916_p4), %s186_s7, 4294966784 }
  0x23   : > { %821 = dma.done.wait (%p906_p1), [#allocation6], 512  }
  0x24   : > { %823 = vsyncadd (%p906_p1), [#allocation6], 4294966784  ;;  %v611_v0 = vld [vmem:[#allocation5 + $0x18] sm:$0xff]  ;;  %v610_v1 = vld [vmem:[#allocation5 + $0x10] sm:$0xff]  ;;  %vm278_vm0 = vcmask 523264   ;;  %s561_s17 = sshll.u32 %s977_s30, 6 }
  0x25   : > { %295 = vmatpush.bf16.msra.mxu0 %v611_v0  ;;  %613 = vmatpush.bf16.msra.mxu1 %v611_v0  ;;  %v609_v2 = vld [vmem:[#allocation5 + $0x8] sm:$0xff]  ;;  %v608_v3 = vld [vmem:[#allocation5] sm:$0xff]  ;;  %v606_v6 = vld [vmem:[%s189_s15 + $0x10] sm:$0xff]  ;;  %s612_s19 = sshll.u32 %s842_s12, 6  ;;  %s215_s12 = scalar_lea.vmem [#allocation7], %s561_s17 }
  0x26   : > { %614 = vmatpush.bf16.msra.mxu2 %v611_v0  ;;  %615 = vmatpush.bf16.msra.mxu3 %v611_v0  ;;  %v604_v4 = vld [vmem:[%s189_s15] sm:$0xff]  ;;  %v605_v5 = vld [vmem:[%s189_s15 + $0x8] sm:$0xff]  ;;  %v607_v7 = vld [vmem:[%s189_s15 + $0x18] sm:$0xff]  ;;  %s444_s28 = scalar_lea.hbm %s1033_s2, %s612_s19  ;;  %s445_s3 = sshll.u32 %s215_s12, 4  ;;  %s446_s3 = int_to_ptr.vmem [resolvable:$true] %s445_s3 }
  0x27   : > { %s447_s6 = sshll.u32 %s444_s28, 4  ;;  %s432_s16 = scalar_lea.sflag [#allocation4], %s977_s30  ;;  %s448_s6 = int_to_ptr.hbm [resolvable:$true] %s447_s6 }
  0x28   : > { %s778_s21 = sshra.s32 %s448_s6, 4  ;;  %s784_s18 = scalar_lea.hbm %s1033_s2, 128  ;;  %s779_s21 = int_to_ptr.hbm [resolvable:$true] %s778_s21 }
  0x29   : > { %296 = vmatpush.bf16.msra.mxu0 %v610_v1  ;;  %616 = vmatpush.bf16.msra.mxu1 %v610_v1  ;;  %s780_s22 = scalar_lea.hbm %s779_s21, 64  ;;  %p785_p10 = scmp.lt.s32.totalorder %s779_s21, %s1033_s2 }
  0x2a   : > { %617 = vmatpush.bf16.msra.mxu2 %v610_v1  ;;  %618 = vmatpush.bf16.msra.mxu3 %v610_v1  ;;  %p781_p1 = scmp.ne.s32.totalorder %s779_s21, %s780_s22  ;;  %p786_p12 = scmp.lt.s32.totalorder %s784_s18, %s780_s22 }
  0x2c   : > { %p782_p4 = pnand %p781_p1, %p954_p5  ;;  %p787_p13 = por %p786_p12, %p785_p10 }
  0x2d   : > { %297 = vmatpush.bf16.msra.mxu0 %v609_v2  ;;  %619 = vmatpush.bf16.msra.mxu1 %v609_v2 }
  0x2e   : > { %620 = vmatpush.bf16.msra.mxu2 %v609_v2  ;;  %621 = vmatpush.bf16.msra.mxu3 %v609_v2  ;;  %p783_p8 = pneg %p782_p4 }
  0x30   : > { %p788_p0 = pnand %p787_p13, %p783_p8 }
  0x31   : > { %298 = vmatpush.bf16.msra.mxu0 %v608_v3  ;;  %622 = vmatpush.bf16.msra.mxu1 %v608_v3 }
  0x32   : > { %623 = vmatpush.bf16.msra.mxu2 %v608_v3  ;;  %624 = vmatpush.bf16.msra.mxu3 %v608_v3 }
  0x34   : > { %594 = vmatmul.msk.bf16.vlgmr.msra.gmra.mxu0 %vm278_vm0, %v604_v4  ;;  %595 = vmatmul.msk.bf16.vlgmr.msra.gmra.mxu1 %vm278_vm0, %v605_v5 }
  0x35   : > { %596 = vmatmul.msk.bf16.vlgmr.msra.gmra.mxu2 %vm278_vm0, %v606_v6  ;;  %597 = vmatmul.msk.bf16.vlgmr.msra.gmra.mxu3 %vm278_vm0, %v607_v7 }
  0xb1   : > { %v300_v8 = vpop.f32.mrf.mxu0  ;;  %v305_v9 = vpop.f32.mrf.mxu1 }
  0xb8   : > { %v310_v10 = vpop.f32.mrf.mxu2  ;;  %v315_v13 = vpop.f32.mrf.mxu3 }
  0xb9   : > { %v302_v11 = vpop.f32.mrf.mxu0  ;;  %v307_v15 = vpop.f32.mrf.mxu1 }
  0xba   : > { %v336_v12 = vadd.f32 %v302_v11, %v300_v8 }
  0xbc   : > { %v337_v14 = vadd.f32 %v336_v12, %v305_v9 }
  0xbe   : > { %v338_v16 = vadd.f32 %v337_v14, %v307_v15 }
  0xc0   : > { %v339_v17 = vadd.f32 %v338_v16, %v310_v10  ;;  %v312_v18 = vpop.f32.mrf.mxu2  ;;  %v317_v21 = vpop.f32.mrf.mxu3 }
  0xc2   : > { %v340_v19 = vadd.f32 %v339_v17, %v312_v18 }
  0xc4   : > { %v341_v20 = vadd.f32 %v340_v19, %v315_v13 }
  0xc6   : > { %v342_v22 = vadd.f32 %v341_v20, %v317_v21 }
  0xc8   : > { %v343_v23 = vrot.slane %v342_v22, 4 }
  0xca   : > { %v344_v24 = vadd.f32 %v343_v23, %v342_v22 }
  0xcc   : > { %v345_v25 = vrot.slane %v344_v24, 2 }
  0xce   : > { %v346_v26 = vadd.f32 %v345_v25, %v344_v24 }
  0xd0   : > { %v347_v27 = vrot.slane %v346_v26, 1 }
  0xd2   : > { %v348_v28 = vadd.f32 %v347_v27, %v346_v26 }
  0xd4   : > { %v349_v29 = vmul.f32 0.015625, %v348_v28 }
  0xd6   : > { %v350_v30 = vsub.f32 %v300_v8, %v349_v29  ;;  %v351_v31 = vsub.f32 %v302_v11, %v349_v29  ;;  %v352_v32 = vsub.f32 %v305_v9, %v349_v29  ;;  %v353_v33 = vsub.f32 %v307_v15, %v349_v29 }
  0xd7   : > { %v354_v36 = vsub.f32 %v310_v10, %v349_v29  ;;  %v355_v39 = vsub.f32 %v312_v18, %v349_v29  ;;  %v356_v42 = vsub.f32 %v315_v13, %v349_v29  ;;  %v357_v45 = vsub.f32 %v317_v21, %v349_v29 }
  0xd8   : > { %v358_v34 = vmul.f32 %v350_v30, %v350_v30  ;;  %v359_v35 = vmul.f32 %v351_v31, %v351_v31  ;;  %v360_v37 = vmul.f32 %v352_v32, %v352_v32  ;;  %v361_v40 = vmul.f32 %v353_v33, %v353_v33 }
  0xd9   : > { %v362_v43 = vmul.f32 %v354_v36, %v354_v36  ;;  %v363_v46 = vmul.f32 %v355_v39, %v355_v39  ;;  %v364_v48 = vmul.f32 %v356_v42, %v356_v42  ;;  %v365_v50 = vmul.f32 %v357_v45, %v357_v45 }
  0xda   : > { %v366_v38 = vadd.f32 %v359_v35, %v358_v34 }
  0xdc   : > { %v367_v41 = vadd.f32 %v366_v38, %v360_v37 }
  0xde   : > { %v368_v44 = vadd.f32 %v367_v41, %v361_v40 }
  0xe0   : > { %v369_v47 = vadd.f32 %v368_v44, %v362_v43 }
  0xe2   : > { %v370_v49 = vadd.f32 %v369_v47, %v363_v46 }
  0xe4   : > { %v371_v51 = vadd.f32 %v370_v49, %v364_v48 }
  0xe6   : > { %v372_v52 = vadd.f32 %v371_v51, %v365_v50 }
  0xe8   : > { %v373_v53 = vrot.slane %v372_v52, 4 }
  0xea   : > { %v374_v54 = vadd.f32 %v373_v53, %v372_v52 }
  0xec   : > { %v375_v55 = vrot.slane %v374_v54, 2 }
  0xee   : > { %v376_v56 = vadd.f32 %v375_v55, %v374_v54 }
  0xf0   : > { %v377_v57 = vrot.slane %v376_v56, 1 }
  0xf2   : > { %v378_v58 = vadd.f32 %v377_v57, %v376_v56 }
  0xf4   : > { %v379_v59 = vmul.f32 0.015625, %v378_v58 }
  0xf6   : > { %v380_v60 = vadd.f32 1e-05, %v379_v59 }
  0xf8   : > { %702 = vrsqrt.f32 %v380_v60  ;;  %vm387_vm2 = vweird.f32 %v380_v60 }
  0xfe   : > { %v703_v61 = vpop.eup %702 }
  0xff   : > { %v382_v62 = vmul.f32 %v703_v61, %v380_v60  ;;  %vm388_vm1 = vweird.f32 %v703_v61 }
 0x100   : > { %vm389_vm3 = vmor %vm387_vm2, %vm388_vm1 }
 0x101   : > { %v383_v63 = vmul.f32 %v703_v61, %v382_v62 }
 0x103   : > { %v384_v0 = vmul.f32 0.5, %v383_v63 }
 0x105   : > { %v385_v1 = vsub.f32 1.5, %v384_v0 }
 0x107   : > { %v386_v2 = vmul.f32 %v703_v61, %v385_v1 }
 0x109   : > { %v390_v3 = vsel %vm389_vm3, %v703_v61, %v386_v2 }
 0x10a   : > { %v391_v4 = vmul.f32 %v390_v3, %v350_v30  ;;  %v392_v5 = vmul.f32 %v390_v3, %v351_v31  ;;  %v393_v6 = vmul.f32 %v390_v3, %v352_v32  ;;  %v394_v7 = vmul.f32 %v390_v3, %v353_v33 }
 0x10b   : > { %v395_v8 = vmul.f32 %v390_v3, %v354_v36  ;;  %v396_v9 = vmul.f32 %v390_v3, %v355_v39  ;;  %v397_v10 = vmul.f32 %v390_v3, %v356_v42  ;;  %v398_v11 = vmul.f32 %v390_v3, %v357_v45 }
 0x10c   : > { %vm399_vm4 = vcmp.ge.f32.partialorder %v391_v4, 0.0  ;;  %vm400_vm5 = vcmp.ge.f32.partialorder %v392_v5, 0.0  ;;  %vm401_vm6 = vcmp.ge.f32.partialorder %v393_v6, 0.0  ;;  %vm402_vm7 = vcmp.ge.f32.partialorder %v394_v7, 0.0 }
 0x10d   : > { %vm403_vm8 = vcmp.ge.f32.partialorder %v395_v8, 0.0  ;;  %v407_v12 = vmul.f32 0.2, %v391_v4  ;;  %v408_v13 = vmul.f32 0.2, %v392_v5  ;;  %vm404_vm9 = vcmp.ge.f32.partialorder %v396_v9, 0.0 }
 0x10e   : > { %v409_v14 = vmul.f32 0.2, %v393_v6  ;;  %v410_v15 = vmul.f32 0.2, %v394_v7  ;;  %v411_v16 = vmul.f32 0.2, %v395_v8 }
 0x10f   : > { %v412_v17 = vmul.f32 0.2, %v396_v9  ;;  %v413_v18 = vmul.f32 0.2, %v397_v10  ;;  %v415_v19 = vsel %vm399_vm4, %v391_v4, %v407_v12  ;;  %v416_v20 = vsel %vm400_vm5, %v392_v5, %v408_v13 }
 0x110   : > { %vm405_vm10 = vcmp.ge.f32.partialorder %v397_v10, 0.0  ;;  %v414_v21 = vmul.f32 0.2, %v398_v11  ;;  %v417_v22 = vsel %vm401_vm6, %v393_v6, %v409_v14  ;;  %v418_v23 = vsel %vm402_vm7, %v394_v7, %v410_v15  ;;  %423 = vst [vmem:[%s215_s12] sm:$0xff] %v415_v19 }
 0x111   : > { %vm406_vm11 = vcmp.ge.f32.partialorder %v398_v11, 0.0  ;;  %v419_v24 = vsel %vm403_vm8, %v395_v8, %v411_v16  ;;  %424 = vst [vmem:[%s215_s12 + $0x8] sm:$0xff] %v416_v20  ;;  %v420_v25 = vsel %vm404_vm9, %v396_v9, %v412_v17  ;;  %v421_v26 = vsel %vm405_vm10, %v397_v10, %v413_v18 }
 0x112   : > { %425 = vst [vmem:[%s215_s12 + $0x10] sm:$0xff] %v417_v22  ;;  %v422_v27 = vsel %vm406_vm11, %v398_v11, %v414_v21 }
 0x113   : > { %426 = vst [vmem:[%s215_s12 + $0x18] sm:$0xff] %v418_v23 }
 0x114   : > { %427 = vst [vmem:[%s215_s12 + $0x20] sm:$0xff] %v419_v24 }
 0x115   : > { %428 = vst [vmem:[%s215_s12 + $0x28] sm:$0xff] %v420_v25 }
 0x116   : > { %429 = vst [vmem:[%s215_s12 + $0x30] sm:$0xff] %v421_v26 }
 0x117   : > { %430 = vst [vmem:[%s215_s12 + $0x38] sm:$0xff] %v422_v27 }
 0x118   : > { %791 = shalt.err (!%p788_p0)
}
 0x119   : > { %s855_s30 = smov 128   ;;  %s856_s7 = smov 8  }
 0x11a   : > { %631 = dma.vmem_to_hbm [thread:$0]  (%p954_p5), %s446_s3, 1024, %s448_s6, %s432_s16, %s855_s30, %s855_s30, %s856_s7  }
 0x11b PF: > { %s462_s15 = sand.u32 1, %s830_s9   ;;  %p642_p3 = pnand %p554_p11, %p921_p6 }
 0x11c   : > { %s463_s17 = scalar_lea.sflag [#allocation4], %s462_s15 }
 0x11d   : > { %p643_p7 = pneg %p642_p3 }
 0x11f   : > { %825 = dma.done.wait (%p643_p7), %s463_s17, 1024  }
 0x120   : > { %827 = vsyncadd (%p643_p7), %s463_s17, 4294966272  ;;  %s19_s14 = sadd.s32 1, %s850_s14   ;;  %s1041_s9 = smov %s834_s10 }
 0x121   : > { %p16_p9 = scmp.ge.s32.totalorder %s19_s14, 4   ;;  %s1042_s10 = smov %s838_s11 }
 0x122   : > { %s1043_s11 = smov %s963_s8  ;;  %s1044_s12 = smov %s846_s13 }
 0x123   : > { %s1045_s13 = smov %s1047_s29  ;;  %18 = sbr.rel (!%p16_p9) target bundleno = 7 (0x7), region = 78 }
 0x128   :  { %469 = vsyncpa [#allocation3], 1 }
 0x129   :  { %471 = vsyncpa [#allocation3 + $0x1], 1 }
 0x12a   :  { %472 = vsyncpa [#allocation6], 1 }
 0x12b   :  { %473 = vsyncpa [#allocation4], 1 }
 0x12c   :  { %475 = vsyncpa [#allocation4 + $0x1], 1 }

</bundles_post_ra>
